<compile_context>
chip_gen: v7x
topology: tpu7x:2x2x1
jax: 0.10.0
libtpu: 0.0.40
codegen_flags: <defaults>
</compile_context>

<pallas_src>
import functools

import jax
import jax.numpy as jnp
from jax import lax
from jax.experimental import pallas as pl
from jax.experimental.pallas import tpu as pltpu


# ----------------------------- fused Pallas kernel ---------------------------

def _conv1d_relu_2d(a2, w_mat, b, tile_n):
    """Valid 1D conv + bias + ReLU as ONE matmul in the lane-dense layout.

    a2:    (Cin, L*tile_n) f32   -- element [c, l*tile_n + n] = act[c, l, n]
    w_mat: (Cout, K*Cin)         -- element [o, k*Cin + c]    = torch_w[o, c, k]
    b:     (Cout, 1) f32
    returns (Cout, L_out*tile_n) f32, same layout convention.
    """
    cin = a2.shape[0]
    l_in = a2.shape[1] // tile_n
    k_sz = w_mat.shape[1] // cin
    l_out = l_in - k_sz + 1
    # K shifted tap slices: column windows at lane-tile aligned offsets
    # (multiples of 128), stacked along sublanes -> im2col patches.
    patches = jnp.concatenate(
        [a2[:, k * tile_n:(k + l_out) * tile_n] for k in range(k_sz)], axis=0)
    y = jnp.dot(w_mat, patches.astype(w_mat.dtype),
                preferred_element_type=jnp.float32)       # (Cout, L_out*tile_n)
    return jnp.maximum(y + b, 0.0)                        # bias/ReLU stay f32


def fused_forward_kernel(x_ref,
                         w1_ref, b1_ref, w2_ref, b2_ref,
                         w3_ref, b3_ref, w4_ref, b4_ref,
                         w5_ref, b5_ref, w6_ref, b6_ref,
                         o_ref):
    """Whole FourCNNLayers forward for one batch tile; nothing leaves VMEM."""
    tile_n = o_ref.shape[1]
    a = x_ref[0]                                          # (Cin, L*tile_n) f32
    a = _conv1d_relu_2d(a, w1_ref[...], b1_ref[...], tile_n)
    a = _conv1d_relu_2d(a, w2_ref[...], b2_ref[...], tile_n)
    a = _conv1d_relu_2d(a, w3_ref[...], b3_ref[...], tile_n)
    a = _conv1d_relu_2d(a, w4_ref[...], b4_ref[...], tile_n)   # (C4, L4*tile_n)

    # Flatten + Linear1 + ReLU as ONE contraction over C4*L4 = 64.
    l4 = a.shape[1] // tile_n
    # a_flat[l*C4 + c, n] = act[c, l, n]; pieces are whole (C4, tile_n) tiles.
    a_flat = jnp.concatenate(
        [a[:, l * tile_n:(l + 1) * tile_n] for l in range(l4)], axis=0)
    w5 = w5_ref[...]                                      # (F1, L4*C4), l-major
    h = jnp.dot(w5, a_flat.astype(w5.dtype), preferred_element_type=jnp.float32)
    h = jnp.maximum(h + b5_ref[...], 0.0)                 # (F1, tile_n)

    # Final Linear; F2 zero-padded to 128 -> fully dense (128, tile_n) store.
    w6 = w6_ref[...]                                      # (F2_pad, F1)
    y = jnp.dot(w6, h.astype(w6.dtype), preferred_element_type=jnp.float32)
    o_ref[...] = (y + b6_ref[...]).astype(o_ref.dtype)


# ------------------------------ host wrappers --------------------------------

def _round_up(x, m):
    return ((x + m - 1) // m) * m


def prepare_params(weights, input_len, compute_dtype=jnp.float32):
    """One-time re-layout of torch-style params for the fused kernel.

    compute_dtype=jnp.bfloat16 stores the MXU operands in bf16 (recommended on
    v6e/v7x); accumulation and all bias/ReLU math stay in f32 (v5e-friendly).
    """
    prepared = []
    length = input_len
    for w, b in weights[:4]:
        cout, cin, k = w.shape
        # (Cout, Cin, K) -> (Cout, K*Cin), column index k*Cin + c (im2col order).
        w_mat = jnp.transpose(w, (0, 2, 1)).reshape(cout, k * cin)
        prepared += [w_mat.astype(compute_dtype),
                     b.reshape(cout, 1).astype(jnp.float32)]
        length = length - k + 1                           # valid-conv output len
    c4 = weights[3][0].shape[0]
    w5, b5 = weights[4]
    f1 = w5.shape[0]
    assert w5.shape[1] == c4 * length, (w5.shape, c4, length)
    # torch.flatten column index c*L4 + l  ->  kernel's l-major index l*C4 + c.
    w5_lmaj = (w5.reshape(f1, c4, length).transpose(0, 2, 1)
                 .reshape(f1, length * c4))
    w6, b6 = weights[5]
    f2 = w6.shape[0]
    f2_pad = _round_up(f2, 128)                           # lane-dense output rows
    w6_pad = jnp.zeros((f2_pad, f1), w6.dtype).at[:f2].set(w6)
    b6_pad = jnp.zeros((f2_pad, 1), jnp.float32).at[:f2, 0].set(b6)
    prepared += [w5_lmaj.astype(compute_dtype),
                 b5.reshape(f1, 1).astype(jnp.float32),
                 w6_pad.astype(compute_dtype), b6_pad]
    return tuple(prepared)


@functools.partial(jax.jit, static_argnames=("num_classes", "tile_n"))
def four_cnn_layers_forward(x, prepared, *, num_classes, tile_n=128):
    """Fused forward: one pallas_call, grid over batch tiles of tile_n samples."""
    assert tile_n % 128 == 0, "tile_n must be a multiple of the 128-lane width"
    n, cin, length = x.shape
    n_pad = _round_up(max(n, 1), tile_n)
    num_tiles = n_pad // tile_n
    f2_pad = prepared[-2].shape[0]

    # Host-side (XLA) relayout into the kernel's lane-dense per-tile layout:
    #   x_tiles[i, c, l*tile_n + n] = x[i*tile_n + n, c, l]
    xp = jnp.pad(x.astype(jnp.float32), ((0, n_pad - n), (0, 0), (0, 0)))
    x_tiles = (xp.reshape(num_tiles, tile_n, cin, length)
                 .transpose(0, 2, 3, 1)
                 .reshape(num_tiles, cin, length * tile_n))

    # Advisory cost estimate so XLA can schedule around the custom call.
    flops = 0
    l_cur, c_cur = length, cin
    for i in range(4):
        w_mat = prepared[2 * i]
        cout = w_mat.shape[0]
        k = w_mat.shape[1] // c_cur
        l_cur = l_cur - k + 1
        flops += 2 * cout * w_mat.shape[1] * l_cur
        c_cur = cout
    flops += 2 * prepared[8].shape[0] * prepared[8].shape[1]      # Linear1
    flops += 2 * prepared[10].shape[0] * prepared[10].shape[1]    # Linear2
    flops *= n_pad
    bytes_accessed = (x_tiles.size * x_tiles.dtype.itemsize
                      + sum(p.size * p.dtype.itemsize for p in prepared)
                      + f2_pad * n_pad * 4)

    in_specs = [pl.BlockSpec((1, cin, length * tile_n), lambda i: (i, 0, 0))]
    # Weights/biases: full-array blocks, constant index_map -> VMEM resident.
    in_specs += [pl.BlockSpec(p.shape, lambda i: (0, 0)) for p in prepared]

    out = pl.pallas_call(
        fused_forward_kernel,
        out_shape=jax.ShapeDtypeStruct((f2_pad, n_pad), jnp.float32),
        grid=(num_tiles,),
        in_specs=in_specs,
        out_specs=pl.BlockSpec((f2_pad, tile_n), lambda i: (0, i)),
        compiler_params=pltpu.CompilerParams(
            dimension_semantics=("parallel",),
            vmem_limit_bytes=32 * 1024 * 1024),
        cost_estimate=pl.CostEstimate(
            flops=flops, transcendentals=0, bytes_accessed=bytes_accessed),
    )(x_tiles, *prepared)

    return out[:num_classes, :n].T                        # (N, num_classes)


def init_params(key, params_spec):
    """Deterministic parameter init (shapes match the torch module)."""
    weights = []
    for spec in params_spec[:4]:                          # 4 conv layers
        cin, cout, k = spec
        key, k1, k2 = jax.random.split(key, 3)
        bound = 1.0 / (cin * k) ** 0.5
        w = jax.random.uniform(k1, (cout, cin, k), jnp.float32, -bound, bound)
        b = jax.random.uniform(k2, (cout,), jnp.float32, -bound, bound)
        weights.append((w, b))
    for spec in params_spec[4:6]:                         # 2 linear layers
        fin, fout = spec
        key, k1, k2 = jax.random.split(key, 3)
        bound = 1.0 / fin ** 0.5
        w = jax.random.uniform(k1, (fout, fin), jnp.float32, -bound, bound)
        b = jax.random.uniform(k2, (fout,), jnp.float32, -bound, bound)
        weights.append((w, b))
    return weights


# --------------------------- pure-JAX reference ------------------------------

def reference_forward(x, weights):
    for i in range(4):
        w, b = weights[i]
        y = lax.conv_general_dilated(
            x, w, window_strides=(1,), padding="VALID",
            dimension_numbers=("NCH", "OIH", "NCH"))
        x = jax.nn.relu(y + b[None, :, None])
    x = x.reshape(x.shape[0], -1)
    w, b = weights[4]
    x = jax.nn.relu(x @ w.T + b)
    w, b = weights[5]
    x = x @ w.T + b
    return x


# --------------------------------- main --------------------------------------

if __name__ == "__main__":
    # params list analogous to the torch module's `params`:
    #   4 conv specs (in_ch, out_ch, kernel) + 2 linear specs (in_f, out_f)
    params_spec = [(4, 8, 3), (8, 8, 3), (8, 8, 3), (8, 8, 3), (64, 32), (32, 10)]

    key = jax.random.PRNGKey(0)
    key, xkey, xkey2 = jax.random.split(key, 3)
    N, Cin, L = 2, 4, 16                  # L: 16 -> 14 -> 12 -> 10 -> 8 ; 8*8 = 64
    x = jax.random.normal(xkey, (N, Cin, L), jnp.float32)

    weights = init_params(key, params_spec)
    F2 = params_spec[-1][1]
    ref = reference_forward(x, weights)

    # f32 MXU operands (v5e default) -- exact check vs pure-JAX reference.
    prepared_f32 = prepare_params(weights, L, compute_dtype=jnp.float32)
    out = jax.block_until_ready(
        four_cnn_layers_forward(x, prepared_f32, num_classes=F2))
    assert out.shape == (N, F2), out.shape
    assert jnp.allclose(out, ref, atol=1e-4, rtol=1e-4), "f32 mismatch vs reference"

    # Multi-tile batch (exercises the parallel grid + batch padding path).
    Nb = 300
    xb = jax.random.normal(xkey2, (Nb, Cin, L), jnp.float32)
    outb = jax.block_until_ready(
        four_cnn_layers_forward(xb, prepared_f32, num_classes=F2))
    refb = reference_forward(xb, weights)
    assert outb.shape == (Nb, F2), outb.shape
    assert jnp.allclose(outb, refb, atol=1e-4, rtol=1e-4), "multi-tile mismatch"

    # bf16 MXU operands (recommended on v6e/v7x); f32 accumulate, looser tol.
    prepared_bf16 = prepare_params(weights, L, compute_dtype=jnp.bfloat16)
    out_bf = jax.block_until_ready(
        four_cnn_layers_forward(x, prepared_bf16, num_classes=F2))
    assert jnp.allclose(out_bf, ref, atol=5e-2, rtol=5e-2), "bf16 mismatch vs reference"

    print("KERNEL_OK")
</pallas_src>

<mosaic_0001>
module attributes {stable_mosaic.version = 11 : i64} {
  func.func @fused_forward_kernel(%arg0: i32, %arg1: memref<1x4x2048xf32, #tpu.memory_space<vmem>>, %arg2: memref<8x12xf32, #tpu.memory_space<vmem>>, %arg3: memref<8x1xf32, #tpu.memory_space<vmem>>, %arg4: memref<8x24xf32, #tpu.memory_space<vmem>>, %arg5: memref<8x1xf32, #tpu.memory_space<vmem>>, %arg6: memref<8x24xf32, #tpu.memory_space<vmem>>, %arg7: memref<8x1xf32, #tpu.memory_space<vmem>>, %arg8: memref<8x24xf32, #tpu.memory_space<vmem>>, %arg9: memref<8x1xf32, #tpu.memory_space<vmem>>, %arg10: memref<32x64xf32, #tpu.memory_space<vmem>>, %arg11: memref<32x1xf32, #tpu.memory_space<vmem>>, %arg12: memref<128x32xf32, #tpu.memory_space<vmem>>, %arg13: memref<128x1xf32, #tpu.memory_space<vmem>>, %arg14: memref<128x128xf32, #tpu.memory_space<vmem>>) attributes {dimension_semantics = [#tpu.dimension_semantics<parallel>], iteration_bounds = array<i64: 1>, scalar_prefetch = 0 : i64, scratch_operands = 0 : i64, tpu.core_type = #tpu.core_type<tc>, window_params = [{transform_indices = @transform_0, window_bounds = array<i64: 1, 4, 2048>}, {pipeline_mode = #tpu.pipeline_mode<synchronous>, transform_indices = @transform_1, window_bounds = array<i64: 8, 12>}, {pipeline_mode = #tpu.pipeline_mode<synchronous>, transform_indices = @transform_2, window_bounds = array<i64: 8, 1>}, {pipeline_mode = #tpu.pipeline_mode<synchronous>, transform_indices = @transform_3, window_bounds = array<i64: 8, 24>}, {pipeline_mode = #tpu.pipeline_mode<synchronous>, transform_indices = @transform_4, window_bounds = array<i64: 8, 1>}, {pipeline_mode = #tpu.pipeline_mode<synchronous>, transform_indices = @transform_5, window_bounds = array<i64: 8, 24>}, {pipeline_mode = #tpu.pipeline_mode<synchronous>, transform_indices = @transform_6, window_bounds = array<i64: 8, 1>}, {pipeline_mode = #tpu.pipeline_mode<synchronous>, transform_indices = @transform_7, window_bounds = array<i64: 8, 24>}, {pipeline_mode = #tpu.pipeline_mode<synchronous>, transform_indices = @transform_8, window_bounds = array<i64: 8, 1>}, {pipeline_mode = #tpu.pipeline_mode<synchronous>, transform_indices = @transform_9, window_bounds = array<i64: 32, 64>}, {pipeline_mode = #tpu.pipeline_mode<synchronous>, transform_indices = @transform_10, window_bounds = array<i64: 32, 1>}, {pipeline_mode = #tpu.pipeline_mode<synchronous>, transform_indices = @transform_11, window_bounds = array<i64: 128, 32>}, {pipeline_mode = #tpu.pipeline_mode<synchronous>, transform_indices = @transform_12, window_bounds = array<i64: 128, 1>}, {transform_indices = @transform_13, window_bounds = array<i64: 128, 128>}]} {
    %c0 = arith.constant 0 : index
    %c0_0 = arith.constant 0 : index
    %c0_1 = arith.constant 0 : index
    %0 = vector.load %arg1[%c0, %c0_0, %c0_1] : memref<1x4x2048xf32, #tpu.memory_space<vmem>>, vector<1x4x2048xf32>
    %1 = vector.shape_cast %0 : vector<1x4x2048xf32> to vector<4x2048xf32>
    %c0_2 = arith.constant 0 : index
    %c0_3 = arith.constant 0 : index
    %2 = vector.load %arg2[%c0_2, %c0_3] : memref<8x12xf32, #tpu.memory_space<vmem>>, vector<8x12xf32>
    %c0_4 = arith.constant 0 : index
    %c0_5 = arith.constant 0 : index
    %3 = vector.load %arg3[%c0_4, %c0_5] : memref<8x1xf32, #tpu.memory_space<vmem>>, vector<8x1xf32>
    %4 = vector.extract_strided_slice %1 {offsets = [0, 0], sizes = [4, 1792], strides = [1, 1]} : vector<4x2048xf32> to vector<4x1792xf32>
    %5 = vector.extract_strided_slice %1 {offsets = [0, 128], sizes = [4, 1792], strides = [1, 1]} : vector<4x2048xf32> to vector<4x1792xf32>
    %6 = vector.extract_strided_slice %1 {offsets = [0, 256], sizes = [4, 1792], strides = [1, 1]} : vector<4x2048xf32> to vector<4x1792xf32>
    %7 = tpu.concatenate %4, %5, %6 in 0 : vector<4x1792xf32>, vector<4x1792xf32>, vector<4x1792xf32> -> vector<12x1792xf32>
    %cst = arith.constant dense<0.000000e+00> : vector<8x1792xf32>
    %8 = tpu.matmul %2, %7, %cst {dimension_numbers = #tpu.dot_dimension_numbers<[1], [0], [0], [1], [0, 0, 1, 1], [], []>} : vector<8x12xf32>, vector<12x1792xf32>, vector<8x1792xf32> -> vector<8x1792xf32>
    %9 = vector.broadcast %3 : vector<8x1xf32> to vector<8x1792xf32>
    %10 = arith.addf %8, %9 : vector<8x1792xf32>
    %cst_6 = arith.constant 0.000000e+00 : f32
    %11 = vector.broadcast %cst_6 : f32 to vector<8x1792xf32>
    %12 = arith.maximumf %10, %11 : vector<8x1792xf32>
    %c0_7 = arith.constant 0 : index
    %c0_8 = arith.constant 0 : index
    %13 = vector.load %arg4[%c0_7, %c0_8] : memref<8x24xf32, #tpu.memory_space<vmem>>, vector<8x24xf32>
    %c0_9 = arith.constant 0 : index
    %c0_10 = arith.constant 0 : index
    %14 = vector.load %arg5[%c0_9, %c0_10] : memref<8x1xf32, #tpu.memory_space<vmem>>, vector<8x1xf32>
    %15 = vector.extract_strided_slice %12 {offsets = [0, 0], sizes = [8, 1536], strides = [1, 1]} : vector<8x1792xf32> to vector<8x1536xf32>
    %16 = vector.extract_strided_slice %12 {offsets = [0, 128], sizes = [8, 1536], strides = [1, 1]} : vector<8x1792xf32> to vector<8x1536xf32>
    %17 = vector.extract_strided_slice %12 {offsets = [0, 256], sizes = [8, 1536], strides = [1, 1]} : vector<8x1792xf32> to vector<8x1536xf32>
    %18 = tpu.concatenate %15, %16, %17 in 0 : vector<8x1536xf32>, vector<8x1536xf32>, vector<8x1536xf32> -> vector<24x1536xf32>
    %cst_11 = arith.constant dense<0.000000e+00> : vector<8x1536xf32>
    %19 = tpu.matmul %13, %18, %cst_11 {dimension_numbers = #tpu.dot_dimension_numbers<[1], [0], [0], [1], [0, 0, 1, 1], [], []>} : vector<8x24xf32>, vector<24x1536xf32>, vector<8x1536xf32> -> vector<8x1536xf32>
    %20 = vector.broadcast %14 : vector<8x1xf32> to vector<8x1536xf32>
    %21 = arith.addf %19, %20 : vector<8x1536xf32>
    %cst_12 = arith.constant 0.000000e+00 : f32
    %22 = vector.broadcast %cst_12 : f32 to vector<8x1536xf32>
    %23 = arith.maximumf %21, %22 : vector<8x1536xf32>
    %c0_13 = arith.constant 0 : index
    %c0_14 = arith.constant 0 : index
    %24 = vector.load %arg6[%c0_13, %c0_14] : memref<8x24xf32, #tpu.memory_space<vmem>>, vector<8x24xf32>
    %c0_15 = arith.constant 0 : index
    %c0_16 = arith.constant 0 : index
    %25 = vector.load %arg7[%c0_15, %c0_16] : memref<8x1xf32, #tpu.memory_space<vmem>>, vector<8x1xf32>
    %26 = vector.extract_strided_slice %23 {offsets = [0, 0], sizes = [8, 1280], strides = [1, 1]} : vector<8x1536xf32> to vector<8x1280xf32>
    %27 = vector.extract_strided_slice %23 {offsets = [0, 128], sizes = [8, 1280], strides = [1, 1]} : vector<8x1536xf32> to vector<8x1280xf32>
    %28 = vector.extract_strided_slice %23 {offsets = [0, 256], sizes = [8, 1280], strides = [1, 1]} : vector<8x1536xf32> to vector<8x1280xf32>
    %29 = tpu.concatenate %26, %27, %28 in 0 : vector<8x1280xf32>, vector<8x1280xf32>, vector<8x1280xf32> -> vector<24x1280xf32>
    %cst_17 = arith.constant dense<0.000000e+00> : vector<8x1280xf32>
    %30 = tpu.matmul %24, %29, %cst_17 {dimension_numbers = #tpu.dot_dimension_numbers<[1], [0], [0], [1], [0, 0, 1, 1], [], []>} : vector<8x24xf32>, vector<24x1280xf32>, vector<8x1280xf32> -> vector<8x1280xf32>
    %31 = vector.broadcast %25 : vector<8x1xf32> to vector<8x1280xf32>
    %32 = arith.addf %30, %31 : vector<8x1280xf32>
    %cst_18 = arith.constant 0.000000e+00 : f32
    %33 = vector.broadcast %cst_18 : f32 to vector<8x1280xf32>
    %34 = arith.maximumf %32, %33 : vector<8x1280xf32>
    %c0_19 = arith.constant 0 : index
    %c0_20 = arith.constant 0 : index
    %35 = vector.load %arg8[%c0_19, %c0_20] : memref<8x24xf32, #tpu.memory_space<vmem>>, vector<8x24xf32>
    %c0_21 = arith.constant 0 : index
    %c0_22 = arith.constant 0 : index
    %36 = vector.load %arg9[%c0_21, %c0_22] : memref<8x1xf32, #tpu.memory_space<vmem>>, vector<8x1xf32>
    %37 = vector.extract_strided_slice %34 {offsets = [0, 0], sizes = [8, 1024], strides = [1, 1]} : vector<8x1280xf32> to vector<8x1024xf32>
    %38 = vector.extract_strided_slice %34 {offsets = [0, 128], sizes = [8, 1024], strides = [1, 1]} : vector<8x1280xf32> to vector<8x1024xf32>
    %39 = vector.extract_strided_slice %34 {offsets = [0, 256], sizes = [8, 1024], strides = [1, 1]} : vector<8x1280xf32> to vector<8x1024xf32>
    %40 = tpu.concatenate %37, %38, %39 in 0 : vector<8x1024xf32>, vector<8x1024xf32>, vector<8x1024xf32> -> vector<24x1024xf32>
    %cst_23 = arith.constant dense<0.000000e+00> : vector<8x1024xf32>
    %41 = tpu.matmul %35, %40, %cst_23 {dimension_numbers = #tpu.dot_dimension_numbers<[1], [0], [0], [1], [0, 0, 1, 1], [], []>} : vector<8x24xf32>, vector<24x1024xf32>, vector<8x1024xf32> -> vector<8x1024xf32>
    %42 = vector.broadcast %36 : vector<8x1xf32> to vector<8x1024xf32>
    %43 = arith.addf %41, %42 : vector<8x1024xf32>
    %cst_24 = arith.constant 0.000000e+00 : f32
    %44 = vector.broadcast %cst_24 : f32 to vector<8x1024xf32>
    %45 = arith.maximumf %43, %44 : vector<8x1024xf32>
    %46 = vector.extract_strided_slice %45 {offsets = [0, 0], sizes = [8, 128], strides = [1, 1]} : vector<8x1024xf32> to vector<8x128xf32>
    %47 = vector.extract_strided_slice %45 {offsets = [0, 128], sizes = [8, 128], strides = [1, 1]} : vector<8x1024xf32> to vector<8x128xf32>
    %48 = vector.extract_strided_slice %45 {offsets = [0, 256], sizes = [8, 128], strides = [1, 1]} : vector<8x1024xf32> to vector<8x128xf32>
    %49 = vector.extract_strided_slice %45 {offsets = [0, 384], sizes = [8, 128], strides = [1, 1]} : vector<8x1024xf32> to vector<8x128xf32>
    %50 = vector.extract_strided_slice %45 {offsets = [0, 512], sizes = [8, 128], strides = [1, 1]} : vector<8x1024xf32> to vector<8x128xf32>
    %51 = vector.extract_strided_slice %45 {offsets = [0, 640], sizes = [8, 128], strides = [1, 1]} : vector<8x1024xf32> to vector<8x128xf32>
    %52 = vector.extract_strided_slice %45 {offsets = [0, 768], sizes = [8, 128], strides = [1, 1]} : vector<8x1024xf32> to vector<8x128xf32>
    %53 = vector.extract_strided_slice %45 {offsets = [0, 896], sizes = [8, 128], strides = [1, 1]} : vector<8x1024xf32> to vector<8x128xf32>
    %54 = tpu.concatenate %46, %47, %48, %49, %50, %51, %52, %53 in 0 : vector<8x128xf32>, vector<8x128xf32>, vector<8x128xf32>, vector<8x128xf32>, vector<8x128xf32>, vector<8x128xf32>, vector<8x128xf32>, vector<8x128xf32> -> vector<64x128xf32>
    %c0_25 = arith.constant 0 : index
    %c0_26 = arith.constant 0 : index
    %55 = vector.load %arg10[%c0_25, %c0_26] : memref<32x64xf32, #tpu.memory_space<vmem>>, vector<32x64xf32>
    %cst_27 = arith.constant dense<0.000000e+00> : vector<32x128xf32>
    %56 = tpu.matmul %55, %54, %cst_27 {dimension_numbers = #tpu.dot_dimension_numbers<[1], [0], [0], [1], [0, 0, 1, 1], [], []>} : vector<32x64xf32>, vector<64x128xf32>, vector<32x128xf32> -> vector<32x128xf32>
    %c0_28 = arith.constant 0 : index
    %c0_29 = arith.constant 0 : index
    %57 = vector.load %arg11[%c0_28, %c0_29] : memref<32x1xf32, #tpu.memory_space<vmem>>, vector<32x1xf32>
    %58 = vector.broadcast %57 : vector<32x1xf32> to vector<32x128xf32>
    %59 = arith.addf %56, %58 : vector<32x128xf32>
    %cst_30 = arith.constant 0.000000e+00 : f32
    %60 = vector.broadcast %cst_30 : f32 to vector<32x128xf32>
    %61 = arith.maximumf %59, %60 : vector<32x128xf32>
    %c0_31 = arith.constant 0 : index
    %c0_32 = arith.constant 0 : index
    %62 = vector.load %arg12[%c0_31, %c0_32] : memref<128x32xf32, #tpu.memory_space<vmem>>, vector<128x32xf32>
    %cst_33 = arith.constant dense<0.000000e+00> : vector<128x128xf32>
    %63 = tpu.matmul %62, %61, %cst_33 {dimension_numbers = #tpu.dot_dimension_numbers<[1], [0], [0], [1], [0, 0, 1, 1], [], []>} : vector<128x32xf32>, vector<32x128xf32>, vector<128x128xf32> -> vector<128x128xf32>
    %c0_34 = arith.constant 0 : index
    %c0_35 = arith.constant 0 : index
    %64 = vector.load %arg13[%c0_34, %c0_35] : memref<128x1xf32, #tpu.memory_space<vmem>>, vector<128x1xf32>
    %65 = vector.broadcast %64 : vector<128x1xf32> to vector<128x128xf32>
    %66 = arith.addf %63, %65 : vector<128x128xf32>
    %c0_36 = arith.constant 0 : index
    %c0_37 = arith.constant 0 : index
    %67 = vector.load %arg14[%c0_36, %c0_37] : memref<128x128xf32, #tpu.memory_space<vmem>>, vector<128x128xf32>
    tpu.vector_store %arg14[%c0_36, %c0_37], %66 {strides = array<i32>} : memref<128x128xf32, #tpu.memory_space<vmem>>, vector<128x128xf32>,
    return
  }
  func.func @transform_0(%arg0: i32) -> (i32, i32, i32) {
    %c0_i32 = arith.constant 0 : i32
    %c0_i32_0 = arith.constant 0 : i32
    %c0_i32_1 = arith.constant 0 : i32
    return %arg0, %c0_i32, %c0_i32_0 : i32, i32, i32
  }
  func.func @transform_1(%arg0: i32) -> (i32, i32) {
    %c0_i32 = arith.constant 0 : i32
    %c0_i32_0 = arith.constant 0 : i32
    %c0_i32_1 = arith.constant 0 : i32
    return %c0_i32, %c0_i32_0 : i32, i32
  }
  func.func @transform_2(%arg0: i32) -> (i32, i32) {
    %c0_i32 = arith.constant 0 : i32
    %c0_i32_0 = arith.constant 0 : i32
    %c0_i32_1 = arith.constant 0 : i32
    return %c0_i32, %c0_i32_0 : i32, i32
  }
  func.func @transform_3(%arg0: i32) -> (i32, i32) {
    %c0_i32 = arith.constant 0 : i32
    %c0_i32_0 = arith.constant 0 : i32
    %c0_i32_1 = arith.constant 0 : i32
    return %c0_i32, %c0_i32_0 : i32, i32
  }
  func.func @transform_4(%arg0: i32) -> (i32, i32) {
    %c0_i32 = arith.constant 0 : i32
    %c0_i32_0 = arith.constant 0 : i32
    %c0_i32_1 = arith.constant 0 : i32
    return %c0_i32, %c0_i32_0 : i32, i32
  }
  func.func @transform_5(%arg0: i32) -> (i32, i32) {
    %c0_i32 = arith.constant 0 : i32
    %c0_i32_0 = arith.constant 0 : i32
    %c0_i32_1 = arith.constant 0 : i32
    return %c0_i32, %c0_i32_0 : i32, i32
  }
  func.func @transform_6(%arg0: i32) -> (i32, i32) {
    %c0_i32 = arith.constant 0 : i32
    %c0_i32_0 = arith.constant 0 : i32
    %c0_i32_1 = arith.constant 0 : i32
    return %c0_i32, %c0_i32_0 : i32, i32
  }
  func.func @transform_7(%arg0: i32) -> (i32, i32) {
    %c0_i32 = arith.constant 0 : i32
    %c0_i32_0 = arith.constant 0 : i32
    %c0_i32_1 = arith.constant 0 : i32
    return %c0_i32, %c0_i32_0 : i32, i32
  }
  func.func @transform_8(%arg0: i32) -> (i32, i32) {
    %c0_i32 = arith.constant 0 : i32
    %c0_i32_0 = arith.constant 0 : i32
    %c0_i32_1 = arith.constant 0 : i32
    return %c0_i32, %c0_i32_0 : i32, i32
  }
  func.func @transform_9(%arg0: i32) -> (i32, i32) {
    %c0_i32 = arith.constant 0 : i32
    %c0_i32_0 = arith.constant 0 : i32
    %c0_i32_1 = arith.constant 0 : i32
    return %c0_i32, %c0_i32_0 : i32, i32
  }
  func.func @transform_10(%arg0: i32) -> (i32, i32) {
    %c0_i32 = arith.constant 0 : i32
    %c0_i32_0 = arith.constant 0 : i32
    %c0_i32_1 = arith.constant 0 : i32
    return %c0_i32, %c0_i32_0 : i32, i32
  }
  func.func @transform_11(%arg0: i32) -> (i32, i32) {
    %c0_i32 = arith.constant 0 : i32
    %c0_i32_0 = arith.constant 0 : i32
    %c0_i32_1 = arith.constant 0 : i32
    return %c0_i32, %c0_i32_0 : i32, i32
  }
  func.func @transform_12(%arg0: i32) -> (i32, i32) {
    %c0_i32 = arith.constant 0 : i32
    %c0_i32_0 = arith.constant 0 : i32
    %c0_i32_1 = arith.constant 0 : i32
    return %c0_i32, %c0_i32_0 : i32, i32
  }
  func.func @transform_13(%arg0: i32) -> (i32, i32) {
    %c0_i32 = arith.constant 0 : i32
    %c0_i32_0 = arith.constant 0 : i32
    return %c0_i32, %arg0 : i32, i32
  }
}

</mosaic_0001>

<bundles_post_ra>
// kernel: four_cnn_layers_forward.1
= control target key start
LH: loop header
LB: loop body
LE: loop exit
PB: predicated region body
PF: predicated region fallthrough
CT: control target
= control target key end

     0   :  { %vm91_vm0 = vcmask 1043456   ;;  %v2521_v2 = vmov 0.0   ;;  %v2522_v8 = vmov 0   ;;  %vm2523_vm1 = vmmov 1   ;;  %s2938_s0 = inlined_call_operand.vmem [shape: f32[1,4,2048], index: 0, kind: input, shape index: {}]   ;;  %s2939_s2 = inlined_call_operand.vmem [shape: f32[8,1], index: 2, kind: input, shape index: {}]   ;;  %s2940_s1 = inlined_call_operand.vmem [shape: f32[8,12], index: 1, kind: input, shape index: {}]   ;;  %s2941_s4 = inlined_call_operand.vmem [shape: f32[8,1], index: 4, kind: input, shape index: {}]   ;;  %s2942_s10 = inlined_call_operand.vmem [shape: f32[32,1], index: 10, kind: input, shape index: {}]   ;;  %s2943_s12 = inlined_call_operand.vmem [shape: f32[128,1], index: 12, kind: input, shape index: {}]   ;;  %s2944_s3 = inlined_call_operand.vmem [shape: f32[8,24], index: 3, kind: input, shape index: {}]   ;;  %s2945_s6 = inlined_call_operand.vmem [shape: f32[8,1], index: 6, kind: input, shape index: {}]   ;;  %s2946_s8 = inlined_call_operand.vmem [shape: f32[8,1], index: 8, kind: input, shape index: {}]   ;;  %s2947_s5 = inlined_call_operand.vmem [shape: f32[8,24], index: 5, kind: input, shape index: {}]   ;;  %s2948_s7 = inlined_call_operand.vmem [shape: f32[8,24], index: 7, kind: input, shape index: {}]   ;;  %s2949_s9 = inlined_call_operand.vmem [shape: f32[32,64], index: 9, kind: input, shape index: {}]   ;;  %s2950_s11 = inlined_call_operand.vmem [shape: f32[128,32], index: 11, kind: input, shape index: {}]   ;;  %s2951_s13 = inlined_call_operand.vmem [shape: f32[128,128], index: 13, kind: output, shape index: {}]  }
   0x1   :  { %v44_v0 = vld [vmem:[%s2938_s0] sm:$0xff]  ;;  %v45_v1 = vld [vmem:[%s2938_s0 + $0x8] sm:$0xff]  ;;  %200 = vmatprep.mubr.f32.mxu0 %v2521_v2  ;;  %271 = vmatprep.mubr.f32.mxu1 %v2521_v2  ;;  %v46_v6 = vld [vmem:[%s2938_s0 + $0x10] sm:$0xff]  ;;  %vm104_vm3 = vcmask 97280   ;;  %vm654_vm4 = vcmask 195584   ;;  %vm1801_vm5 = vcmask 523264  }
   0x2   :  { %v61_v3 = vcombine.high %v44_v0, %v44_v0  ;;  %v62_v4 = vcombine.high %v45_v1, %v45_v1  ;;  %v76_v5 = vcombine.low %v45_v1, %v45_v1  ;;  %v47_v7 = vld [vmem:[%s2938_s0 + $0x18] sm:$0xff]  ;;  %2504 = vset.pattern.permute.xlu0 %v2522_v8  ;;  %v63_v9 = vcombine.high %v46_v6, %v46_v6  ;;  %v48_v13 = vld [vmem:[%s2938_s0 + $0x20] sm:$0xff]  ;;  %v2614_v14 = vld [vmem:[%s2938_s0 + $0x28] sm:$0xff] }
   0x3   :  { %v77_v10 = vcombine.low %v46_v6, %v46_v6  ;;  %v78_v11 = vcombine.low %v47_v7, %v47_v7  ;;  %v2374_v12 = vpack.c.bf16 %v45_v1, %v44_v0  ;;  %2505 = vset.pattern.permute.xlu1 %v2522_v8  ;;  %vm2618_vm2 = vmpackc.low %vm91_vm0, %vm2523_vm1  ;;  %v2380_v17 = vpack.c.bf16 %v46_v6, %v45_v1  ;;  %v50_v20 = vld [vmem:[%s2938_s0 + $0x30] sm:$0xff]  ;;  %v53_v21 = vld [vmem:[%s2939_s2] sm:$0xff] }
   0x4   :  { %v92_v15 = vsel %vm91_vm0, %v61_v3, %v76_v5  ;;  %v64_v18 = vcombine.high %v47_v7, %v47_v7  ;;  %v65_v19 = vcombine.high %v48_v13, %v48_v13  ;;  %v79_v25 = vcombine.low %v48_v13, %v48_v13  ;;  %101 = vperm.xlu0 %2504, %v53_v21   ;;  %v51_v29 = vld [vmem:[%s2938_s0 + $0x38] sm:$0xff]  ;;  %v52_v35 = vld [vmem:[%s2940_s1] sm:$0xff]  ;;  %v1779_v51 = vld [vmem:[%s2942_s10 + $0x10] sm:$0xff] }
   0x5   :  { %v2371_v22 = vpack.c.bf16 %v62_v4, %v92_v15  ;;  %v93_v23 = vsel %vm91_vm0, %v62_v4, %v77_v10  ;;  %v94_v24 = vsel %vm91_vm0, %v63_v9, %v78_v11  ;;  %v66_v28 = vcombine.high %v2614_v14, %v2614_v14  ;;  %v648_v38 = vld [vmem:[%s2941_s4] sm:$0xff]  ;;  %v1921_v53 = vld [vmem:[%s2943_s12 + $0x10] sm:$0xff] }
   0x6   :  { %v2377_v26 = vpack.c.bf16 %v63_v9, %v93_v23  ;;  %v2383_v27 = vpack.c.bf16 %v64_v18, %v94_v24  ;;  %v95_v30 = vsel %vm91_vm0, %v64_v18, %v79_v25  ;;  %v80_v31 = vcombine.low %v2614_v14, %v2614_v14  ;;  %v1777_v50 = vld [vmem:[%s2942_s10] sm:$0xff]  ;;  %v1925_v55 = vld [vmem:[%s2943_s12 + $0x30] sm:$0xff] }
   0x7   :  { %2373 = vmatprep.subr.msk.bf16.mxu0 %vm2618_vm2, %v2371_v22  ;;  %v67_v32 = vcombine.high %v50_v20, %v50_v20  ;;  %v81_v33 = vcombine.low %v50_v20, %v50_v20  ;;  %v2386_v34 = vpack.c.bf16 %v47_v7, %v46_v6  ;;  %v2389_v36 = vpack.c.bf16 %v65_v19, %v95_v30  ;;  %v1919_v52 = vld [vmem:[%s2943_s12] sm:$0xff]  ;;  %v1929_v57 = vld [vmem:[%s2943_s12 + $0x50] sm:$0xff] }
   0x8   :  { %2379 = vmatprep.subr.msk.bf16.mxu1 %vm2618_vm2, %v2377_v26  ;;  %2376 = vmatpush1.bf16.msk.msra.mxu0 %vm2618_vm2, %v2374_v12  ;;  %v2392_v37 = vpack.c.bf16 %v48_v13, %v47_v7  ;;  %v96_v39 = vsel %vm91_vm0, %v65_v19, %v80_v31  ;;  %v82_v41 = vcombine.low %v51_v29, %v51_v29  ;;  %v1923_v54 = vld [vmem:[%s2943_s12 + $0x20] sm:$0xff]  ;;  %v1933_v59 = vld [vmem:[%s2943_s12 + $0x70] sm:$0xff]  ;;  %vm2015_vm6 = vcmask 261120  }
   0x9   :  { %2382 = vmatpush1.bf16.msk.msra.mxu1 %vm2618_vm2, %v2380_v17  ;;  %2385 = vmatprep.subr.msk.bf16.mxu0 %vm2618_vm2, %v2383_v27  ;;  %v97_v40 = vsel %vm91_vm0, %v66_v28, %v81_v33  ;;  %v2395_v42 = vpack.c.bf16 %v66_v28, %v96_v39  ;;  %v90_v43 = vcombine.high %v51_v29, %v51_v29  ;;  %v1927_v56 = vld [vmem:[%s2943_s12 + $0x40] sm:$0xff] }
   0xa   :  { %2391 = vmatprep.subr.msk.bf16.mxu1 %vm2618_vm2, %v2389_v36  ;;  %v2401_v44 = vpack.c.bf16 %v67_v32, %v97_v40  ;;  %v98_v45 = vsel %vm91_vm0, %v67_v32, %v82_v41  ;;  %651 = vperm.xlu0 %2504, %v648_v38   ;;  %v2398_v46 = vpack.c.bf16 %v2614_v14, %v48_v13  ;;  %v1931_v58 = vld [vmem:[%s2943_s12 + $0x60] sm:$0xff] }
   0xb   :  { %2231 = vmatmul.mubr.msk.f32.vlgmr.msra.gmra.mrb[0].mxu0 %vm104_vm3, %v52_v35  ;;  %v2404_v47 = vpack.c.bf16 %v50_v20, %v2614_v14  ;;  %v2407_v48 = vpack.c.bf16 %v90_v43, %v98_v45  ;;  %v2410_v49 = vpack.c.bf16 %v51_v29, %v50_v20  ;;  %v647_v38 = vld [vmem:[%s2944_s3] sm:$0xff] }
   0xc   :  { %2234 = vmatmul.mubr.msk.f32.vlgmr.msra.gmra.mrb[0].mxu1 %vm104_vm3, %v52_v35  ;;  %2388 = vmatpush1.bf16.msk.msra.mxu0 %vm2618_vm2, %v2386_v34 }
   0xd   :  { %2394 = vmatpush1.bf16.msk.msra.mxu1 %vm2618_vm2, %v2392_v37  ;;  %342 = vmatprep.mubr.f32.mxu0 %v2521_v2 }
   0xe   :  { %413 = vmatprep.mubr.f32.mxu1 %v2521_v2  ;;  %2397 = vmatprep.subr.msk.bf16.mxu0 %vm2618_vm2, %v2395_v42 }
   0xf   :  { %2237 = vmatmul.mubr.msk.f32.vlgmr.msra.gmra.mrb[2].mxu0 %vm104_vm3, %v52_v35  ;;  %2403 = vmatprep.subr.msk.bf16.mxu1 %vm2618_vm2, %v2401_v44 }
  0x10   :  { %2240 = vmatmul.mubr.msk.f32.vlgmr.msra.gmra.mrb[2].mxu1 %vm104_vm3, %v52_v35  ;;  %2400 = vmatpush1.bf16.msk.msra.mxu0 %vm2618_vm2, %v2398_v46 }
  0x11   :  { %2406 = vmatpush1.bf16.msk.msra.mxu1 %vm2618_vm2, %v2404_v47  ;;  %484 = vmatprep.mubr.f32.mxu0 %v2521_v2 }
  0x12   :  { %555 = vmatprep.mubr.f32.mxu1 %v2521_v2  ;;  %2409 = vmatprep.subr.msk.bf16.mxu0 %vm2618_vm2, %v2407_v48 }
  0x13   :  { %2243 = vmatmul.mubr.msk.f32.vlgmr.msra.gmra.mrb[4].mxu0 %vm104_vm3, %v52_v35  ;;  %1783 = vperm.xlu0 %2504, %v1777_v50  }
  0x14   :  { %2246 = vmatmul.mubr.msk.f32.vlgmr.msra.gmra.mrb[4].mxu1 %vm104_vm3, %v52_v35  ;;  %2412 = vmatpush1.bf16.msk.msra.mxu0 %vm2618_vm2, %v2410_v49 }
  0x15   :  { %626 = vmatprep.mubr.f32.mxu0 %v2521_v2  ;;  %722 = vmatprep.mubr.f32.mxu1 %v2521_v2 }
  0x17   :  { %2249 = vmatmul.mubr.msk.f32.vlgmr.msra.gmra.mrb[6].mxu0 %vm104_vm3, %v52_v35  ;;  %1793 = vperm.xlu0 %2504, %v1779_v51  }
  0x18   :  { %793 = vmatprep.mubr.f32.mxu0 %v2521_v2 }
  0x1b   :  { %1937 = vperm.xlu0 %2504, %v1919_v52  }
  0x1f   :  { %1947 = vperm.xlu0 %2504, %v1921_v53   ;;  %v1097_v53 = vld [vmem:[%s2945_s6] sm:$0xff] }
  0x20   :  { %1100 = vperm.xlu1 %2505, %v1097_v53  }
  0x23   :  { %1957 = vperm.xlu0 %2504, %v1923_v54   ;;  %v1472_v54 = vld [vmem:[%s2946_s8] sm:$0xff] }
  0x24   :  { %1475 = vperm.xlu1 %2505, %v1472_v54  }
  0x27   :  { %1967 = vperm.xlu0 %2504, %v1925_v55   ;;  %v1778_v55 = vld [vmem:[%s2942_s10 + $0x8] sm:$0xff] }
  0x28   :  { %1788 = vperm.xlu1 %2505, %v1778_v55  }
  0x2b   :  { %1977 = vperm.xlu0 %2504, %v1927_v56   ;;  %v1780_v56 = vld [vmem:[%s2942_s10 + $0x18] sm:$0xff] }
  0x2c   :  { %1798 = vperm.xlu1 %2505, %v1780_v56  }
  0x2f   :  { %1987 = vperm.xlu0 %2504, %v1929_v57   ;;  %v1920_v57 = vld [vmem:[%s2943_s12 + $0x8] sm:$0xff] }
  0x30   :  { %1942 = vperm.xlu1 %2505, %v1920_v57  }
  0x33   :  { %1997 = vperm.xlu0 %2504, %v1931_v58   ;;  %v1922_v58 = vld [vmem:[%s2943_s12 + $0x18] sm:$0xff] }
  0x34   :  { %1952 = vperm.xlu1 %2505, %v1922_v58  }
  0x37   :  { %2007 = vperm.xlu0 %2504, %v1933_v59   ;;  %v1924_v59 = vld [vmem:[%s2943_s12 + $0x28] sm:$0xff] }
  0x38   :  { %1962 = vperm.xlu1 %2505, %v1924_v59  }
  0x83   :  { %v2721_v60 = vpop.permute.xlu0 %101 }
  0xde   :  { %v202_v61 = vpop.f32.mrb[0].mxu0 }
  0xdf   :  { %v203_v62 = vadd.f32 %v202_v61, %v2721_v60  ;;  %v273_v63 = vpop.f32.mrb[0].mxu1  ;;  %v204_v0 = vpop.f32.mrb[1].mxu0  ;;  %v1928_v61 = vld [vmem:[%s2943_s12 + $0x48] sm:$0xff] }
  0xe0   :  { %v274_v1 = vadd.f32 %v273_v63, %v2721_v60  ;;  %v205_v3 = vadd.f32 %v204_v0, %v2721_v60  ;;  %v275_v4 = vpop.f32.mrb[1].mxu1  ;;  %v1932_v63 = vld [vmem:[%s2943_s12 + $0x68] sm:$0xff]  ;;  %v1934_v0 = vld [vmem:[%s2943_s12 + $0x78] sm:$0xff] }
  0xe1   :  { %v633_v5 = vmax.f32 %v203_v62, 0.0  ;;  %v276_v6 = vadd.f32 %v275_v4, %v2721_v60  ;;  %v1930_v62 = vld [vmem:[%s2943_s12 + $0x58] sm:$0xff] }
  0xe2   :  { %v635_v7 = vmax.f32 %v274_v1, 0.0  ;;  %v634_v8 = vmax.f32 %v205_v3, 0.0  ;;  %v344_v9 = vpop.f32.mrb[2].mxu0  ;;  %v652_v1 = vpop.permute.xlu0 %651 }
  0xe3   :  { %v636_v10 = vmax.f32 %v276_v6, 0.0  ;;  %v345_v11 = vadd.f32 %v344_v9, %v2721_v60  ;;  %v415_v12 = vpop.f32.mrb[2].mxu1  ;;  %v346_v13 = vpop.f32.mrb[3].mxu0 }
  0xe4   :  { %v2413_v14 = vpack.c.bf16 %v635_v7, %v634_v8  ;;  %v2415_v15 = vpack.c.bf16 %v634_v8, %v633_v5  ;;  %v416_v16 = vadd.f32 %v415_v12, %v2721_v60  ;;  %v347_v17 = vadd.f32 %v346_v13, %v2721_v60  ;;  %v417_v18 = vpop.f32.mrb[3].mxu1 }
  0xe5   :  { %v2419_v19 = vpack.c.bf16 %v636_v10, %v635_v7  ;;  %v637_v20 = vmax.f32 %v345_v11, 0.0  ;;  %v418_v21 = vadd.f32 %v417_v18, %v2721_v60 }
  0xe6   :  { %v639_v22 = vmax.f32 %v416_v16, 0.0  ;;  %v638_v23 = vmax.f32 %v347_v17, 0.0  ;;  %v486_v24 = vpop.f32.mrb[4].mxu0  ;;  %2414 = vmatprep.subr.bf16.mxu1 %v2413_v14 }
  0xe7   :  { %v640_v25 = vmax.f32 %v418_v21, 0.0  ;;  %v487_v26 = vadd.f32 %v486_v24, %v2721_v60  ;;  %v557_v27 = vpop.f32.mrb[4].mxu1  ;;  %v488_v28 = vpop.f32.mrb[5].mxu0  ;;  %2416 = vmatpush1.bf16.msra.mxu1 %v2415_v15  ;;  %v2417_v29 = vpack.c.bf16 %v637_v20, %v636_v10 }
  0xe8   :  { %v2423_v30 = vpack.c.bf16 %v638_v23, %v637_v20  ;;  %v558_v31 = vadd.f32 %v557_v27, %v2721_v60  ;;  %v489_v32 = vadd.f32 %v488_v28, %v2721_v60  ;;  %v559_v33 = vpop.f32.mrb[5].mxu1  ;;  %662 = vmatprep.subr.mxu1 %v636_v10  ;;  %v2421_v34 = vpack.c.bf16 %v639_v22, %v638_v23 }
  0xe9   :  { %v2427_v35 = vpack.c.bf16 %v640_v25, %v639_v22  ;;  %v641_v36 = vmax.f32 %v487_v26, 0.0  ;;  %v560_v37 = vadd.f32 %v559_v33, %v2721_v60  ;;  %2418 = vmatprep.subr.bf16.mxu0 %v2417_v29 }
  0xea   :  { %v643_v39 = vmax.f32 %v558_v31, 0.0  ;;  %v642_v40 = vmax.f32 %v489_v32, 0.0  ;;  %v628_v41 = vpop.f32.mrb[6].mxu0  ;;  %2420 = vmatpush1.bf16.msra.mxu0 %v2419_v19 }
  0xeb   :  { %v644_v42 = vmax.f32 %v560_v37, 0.0  ;;  %v629_v43 = vadd.f32 %v628_v41, %v2721_v60  ;;  %v630_v44 = vpop.f32.mrb[7].mxu0  ;;  %663 = vmatpush1.msra.mxu1 %v635_v7  ;;  %733 = vmatprep.subr.mxu0 %v638_v23  ;;  %v2425_v45 = vpack.c.bf16 %v641_v36, %v640_v25 }
  0xec   :  { %v2431_v46 = vpack.c.bf16 %v642_v40, %v641_v36  ;;  %2250 = vmatmul.mubr.msk.f32.vlgmr.msra.gmra.mrb[6].mxu1 %vm654_vm4, %v647_v38  ;;  %2422 = vmatprep.subr.bf16.mxu1 %v2421_v34  ;;  %v2429_v47 = vpack.c.bf16 %v643_v39, %v642_v40  ;;  %v631_v51 = vadd.f32 %v630_v44, %v2721_v60  ;;  %v1926_v60 = vld [vmem:[%s2943_s12 + $0x38] sm:$0xff] }
  0xed   :  { %v2435_v48 = vpack.c.bf16 %v644_v42, %v643_v39  ;;  %v645_v49 = vmax.f32 %v629_v43, 0.0  ;;  %2424 = vmatpush1.bf16.msra.mxu1 %v2423_v30  ;;  %864 = vmatprep.mubr.f32.mxu1 %v2521_v2 }
  0xee   :  { %734 = vmatpush1.msra.mxu0 %v637_v20  ;;  %804 = vmatprep.subr.mxu1 %v640_v25  ;;  %v646_v52 = vmax.f32 %v631_v51, 0.0 }
  0xef   :  { %v2433_v50 = vpack.c.bf16 %v645_v49, %v644_v42  ;;  %2251 = vmatmul.mubr.msk.f32.vlgmr.msra.gmra.mrb[8].mxu0 %vm654_vm4, %v647_v38  ;;  %2426 = vmatprep.subr.bf16.mxu0 %v2425_v45 }
  0xf0   :  { %2428 = vmatpush1.bf16.msra.mxu0 %v2427_v35  ;;  %935 = vmatprep.mubr.f32.mxu0 %v2521_v2  ;;  %v1096_v35 = vld [vmem:[%s2947_s5] sm:$0xff] }
  0xf1   :  { %805 = vmatpush1.msra.mxu1 %v639_v22  ;;  %875 = vmatprep.subr.mxu0 %v642_v40 }
  0xf2   :  { %2252 = vmatmul.mubr.msk.f32.vlgmr.msra.gmra.mrb[8].mxu1 %vm654_vm4, %v647_v38  ;;  %2430 = vmatprep.subr.bf16.mxu1 %v2429_v47 }
  0xf3   :  { %2432 = vmatpush1.bf16.msra.mxu1 %v2431_v46  ;;  %1006 = vmatprep.mubr.f32.mxu1 %v2521_v2 }
  0xf4   :  { %876 = vmatpush1.msra.mxu0 %v641_v36  ;;  %946 = vmatprep.subr.mxu1 %v644_v42 }
  0xf5   :  { %2253 = vmatmul.mubr.msk.f32.vlgmr.msra.gmra.mrb[10].mxu0 %vm654_vm4, %v647_v38  ;;  %2434 = vmatprep.subr.bf16.mxu0 %v2433_v50  ;;  %v1101_v50 = vpop.permute.xlu1 %1100 }
  0xf6   :  { %2436 = vmatpush1.bf16.msra.mxu0 %v2435_v48  ;;  %1077 = vmatprep.mubr.f32.mxu0 %v2521_v2 }
  0xf7   :  { %947 = vmatpush1.msra.mxu1 %v643_v39  ;;  %1017 = vmatprep.subr.mxu0 %v646_v52 }
  0xf8   :  { %2254 = vmatmul.mubr.msk.f32.vlgmr.msra.gmra.mrb[10].mxu1 %vm654_vm4, %v647_v38  ;;  %1972 = vperm.xlu1 %2505, %v1926_v60  }
  0xf9   :  { %1170 = vmatprep.mubr.f32.mxu1 %v2521_v2 }
  0xfa   :  { %1018 = vmatpush1.msra.mxu0 %v645_v49 }
  0xfb   :  { %2255 = vmatmul.mubr.msk.f32.vlgmr.msra.gmra.mrb[12].mxu0 %vm654_vm4, %v647_v38 }
  0xfc   :  { %1241 = vmatprep.mubr.f32.mxu0 %v2521_v2  ;;  %1982 = vperm.xlu1 %2505, %v1928_v61  }
 0x100   :  { %1992 = vperm.xlu1 %2505, %v1930_v62  }
 0x104   :  { %2002 = vperm.xlu1 %2505, %v1932_v63  }
 0x108   :  { %2012 = vperm.xlu1 %2505, %v1934_v0  }
 0x1bf   :  { %v724_v3 = vpop.f32.mrb[6].mxu1 }
 0x1c0   :  { %v725_v4 = vadd.f32 %v724_v3, %v652_v1  ;;  %v726_v5 = vpop.f32.mrb[7].mxu1 }
 0x1c1   :  { %v727_v6 = vadd.f32 %v726_v5, %v652_v1 }
 0x1c2   :  { %v1084_v7 = vmax.f32 %v725_v4, 0.0  ;;  %v795_v8 = vpop.f32.mrb[8].mxu0 }
 0x1c3   :  { %v1085_v9 = vmax.f32 %v727_v6, 0.0  ;;  %v796_v10 = vadd.f32 %v795_v8, %v652_v1  ;;  %v797_v11 = vpop.f32.mrb[9].mxu0 }
 0x1c4   :  { %v798_v12 = vadd.f32 %v797_v11, %v652_v1 }
 0x1c5   :  { %v2439_v13 = vpack.c.bf16 %v1085_v9, %v1084_v7  ;;  %v1086_v14 = vmax.f32 %v796_v10, 0.0  ;;  %v866_v15 = vpop.f32.mrb[8].mxu1 }
 0x1c6   :  { %v1087_v16 = vmax.f32 %v798_v12, 0.0  ;;  %v867_v17 = vadd.f32 %v866_v15, %v652_v1  ;;  %v868_v18 = vpop.f32.mrb[9].mxu1 }
 0x1c7   :  { %v869_v19 = vadd.f32 %v868_v18, %v652_v1  ;;  %v2437_v20 = vpack.c.bf16 %v1086_v14, %v1085_v9 }
 0x1c8   :  { %v2443_v21 = vpack.c.bf16 %v1087_v16, %v1086_v14  ;;  %v1088_v22 = vmax.f32 %v867_v17, 0.0  ;;  %v937_v23 = vpop.f32.mrb[10].mxu0 }
 0x1c9   :  { %v1089_v24 = vmax.f32 %v869_v19, 0.0  ;;  %v938_v25 = vadd.f32 %v937_v23, %v652_v1  ;;  %v939_v26 = vpop.f32.mrb[11].mxu0  ;;  %2438 = vmatprep.subr.bf16.mxu1 %v2437_v20  ;;  %v1471_v20 = vld [vmem:[%s2948_s7] sm:$0xff] }
 0x1ca   :  { %v940_v27 = vadd.f32 %v939_v26, %v652_v1  ;;  %2440 = vmatpush1.bf16.msra.mxu1 %v2439_v13  ;;  %v2441_v28 = vpack.c.bf16 %v1088_v22, %v1087_v16 }
 0x1cb   :  { %v2447_v29 = vpack.c.bf16 %v1089_v24, %v1088_v22  ;;  %v1090_v30 = vmax.f32 %v938_v25, 0.0  ;;  %v1008_v31 = vpop.f32.mrb[10].mxu1  ;;  %1110 = vmatprep.subr.mxu1 %v1087_v16 }
 0x1cc   :  { %v1091_v32 = vmax.f32 %v940_v27, 0.0  ;;  %v1009_v33 = vadd.f32 %v1008_v31, %v652_v1  ;;  %v1010_v34 = vpop.f32.mrb[11].mxu1  ;;  %2442 = vmatprep.subr.bf16.mxu0 %v2441_v28  ;;  %v1773_v27 = vld [vmem:[%s2949_s9] sm:$0xff]  ;;  %v1476_v28 = vpop.permute.xlu1 %1475 }
 0x1cd   :  { %v1011_v36 = vadd.f32 %v1010_v34, %v652_v1  ;;  %2444 = vmatpush1.bf16.msra.mxu0 %v2443_v21  ;;  %v2445_v37 = vpack.c.bf16 %v1090_v30, %v1089_v24 }
 0x1ce   :  { %v2451_v38 = vpack.c.bf16 %v1091_v32, %v1090_v30  ;;  %v1092_v39 = vmax.f32 %v1009_v33, 0.0  ;;  %v1079_v40 = vpop.f32.mrb[12].mxu0  ;;  %1111 = vmatpush1.msra.mxu1 %v1086_v14  ;;  %1181 = vmatprep.subr.mxu0 %v1089_v24 }
 0x1cf   :  { %v1093_v41 = vmax.f32 %v1011_v36, 0.0  ;;  %v1080_v42 = vadd.f32 %v1079_v40, %v652_v1  ;;  %v1081_v43 = vpop.f32.mrb[13].mxu0  ;;  %2446 = vmatprep.subr.bf16.mxu1 %v2445_v37  ;;  %2256 = vmatmul.mubr.msk.f32.vlgmr.msra.gmra.mrb[12].mxu1 %vm654_vm4, %v1096_v35 }
 0x1d0   :  { %2448 = vmatpush1.bf16.msra.mxu1 %v2447_v29  ;;  %v2449_v44 = vpack.c.bf16 %v1092_v39, %v1091_v32  ;;  %1312 = vmatprep.mubr.f32.mxu1 %v2521_v2  ;;  %v1082_v47 = vadd.f32 %v1081_v43, %v652_v1 }
 0x1d1   :  { %v2455_v45 = vpack.c.bf16 %v1093_v41, %v1092_v39  ;;  %v1094_v46 = vmax.f32 %v1080_v42, 0.0  ;;  %1182 = vmatpush1.msra.mxu0 %v1088_v22  ;;  %1252 = vmatprep.subr.mxu1 %v1091_v32 }
 0x1d2   :  { %2257 = vmatmul.mubr.msk.f32.vlgmr.msra.gmra.mrb[14].mxu0 %vm654_vm4, %v1096_v35  ;;  %2450 = vmatprep.subr.bf16.mxu0 %v2449_v44  ;;  %v1095_v49 = vmax.f32 %v1082_v47, 0.0 }
 0x1d3   :  { %v2453_v48 = vpack.c.bf16 %v1094_v46, %v1093_v41  ;;  %2452 = vmatpush1.bf16.msra.mxu0 %v2451_v38  ;;  %1383 = vmatprep.mubr.f32.mxu0 %v2521_v2 }
 0x1d4   :  { %1253 = vmatpush1.msra.mxu1 %v1090_v30  ;;  %1323 = vmatprep.subr.mxu0 %v1093_v41 }
 0x1d5   :  { %2258 = vmatmul.mubr.msk.f32.vlgmr.msra.gmra.mrb[14].mxu1 %vm654_vm4, %v1096_v35  ;;  %2454 = vmatprep.subr.bf16.mxu1 %v2453_v48 }
 0x1d6   :  { %2456 = vmatpush1.bf16.msra.mxu1 %v2455_v45  ;;  %1454 = vmatprep.mubr.f32.mxu1 %v2521_v2 }
 0x1d7   :  { %1324 = vmatpush1.msra.mxu0 %v1092_v39  ;;  %1394 = vmatprep.subr.mxu1 %v1095_v49 }
 0x1d8   :  { %2259 = vmatmul.mubr.msk.f32.vlgmr.msra.gmra.mrb[16].mxu0 %vm654_vm4, %v1096_v35 }
 0x1d9   :  { %1545 = vmatprep.mubr.f32.mxu0 %v2521_v2 }
 0x1da   :  { %1395 = vmatpush1.msra.mxu1 %v1094_v46 }
 0x1db   :  { %2260 = vmatmul.mubr.msk.f32.vlgmr.msra.gmra.mrb[16].mxu1 %vm654_vm4, %v1096_v35 }
 0x1dc   :  { %1616 = vmatprep.mubr.f32.mxu1 %v2521_v2 }
 0x2a2   :  { %v1172_v51 = vpop.f32.mrb[12].mxu1 }
 0x2a3   :  { %v1173_v52 = vadd.f32 %v1172_v51, %v1101_v50  ;;  %v1174_v53 = vpop.f32.mrb[13].mxu1 }
 0x2a4   :  { %v1175_v54 = vadd.f32 %v1174_v53, %v1101_v50 }
 0x2a5   :  { %v1461_v55 = vmax.f32 %v1173_v52, 0.0  ;;  %v1243_v56 = vpop.f32.mrb[14].mxu0 }
 0x2a6   :  { %v1462_v57 = vmax.f32 %v1175_v54, 0.0  ;;  %v1244_v58 = vadd.f32 %v1243_v56, %v1101_v50  ;;  %v1245_v59 = vpop.f32.mrb[15].mxu0  ;;  %v1774_v56 = vld [vmem:[%s2949_s9 + $0x8] sm:$0xff] }
 0x2a7   :  { %v1246_v60 = vadd.f32 %v1245_v59, %v1101_v50  ;;  %v1903_v59 = vld [vmem:[%s2950_s11] sm:$0xff] }
 0x2a8   :  { %v2459_v61 = vpack.c.bf16 %v1462_v57, %v1461_v55  ;;  %v1463_v62 = vmax.f32 %v1244_v58, 0.0  ;;  %v1314_v63 = vpop.f32.mrb[14].mxu1  ;;  %v1776_v58 = vld [vmem:[%s2949_s9 + $0x18] sm:$0xff] }
 0x2a9   :  { %v1464_v0 = vmax.f32 %v1246_v60, 0.0  ;;  %v1315_v1 = vadd.f32 %v1314_v63, %v1101_v50  ;;  %v1316_v3 = vpop.f32.mrb[15].mxu1  ;;  %v1907_v60 = vld [vmem:[%s2950_s11 + $0x20] sm:$0xff] }
 0x2aa   :  { %v1317_v4 = vadd.f32 %v1316_v3, %v1101_v50  ;;  %v2457_v5 = vpack.c.bf16 %v1463_v62, %v1462_v57  ;;  %v1775_v57 = vld [vmem:[%s2949_s9 + $0x10] sm:$0xff] }
 0x2ab   :  { %v2463_v6 = vpack.c.bf16 %v1464_v0, %v1463_v62  ;;  %v1465_v7 = vmax.f32 %v1315_v1, 0.0  ;;  %v1385_v8 = vpop.f32.mrb[16].mxu0 }
 0x2ac   :  { %v1466_v9 = vmax.f32 %v1317_v4, 0.0  ;;  %v1386_v10 = vadd.f32 %v1385_v8, %v1101_v50  ;;  %v1387_v11 = vpop.f32.mrb[17].mxu0  ;;  %2458 = vmatprep.subr.bf16.mxu0 %v2457_v5 }
 0x2ad   :  { %v1388_v12 = vadd.f32 %v1387_v11, %v1101_v50  ;;  %2460 = vmatpush1.bf16.msra.mxu0 %v2459_v61  ;;  %v2461_v13 = vpack.c.bf16 %v1465_v7, %v1464_v0  ;;  %v1789_v61 = vpop.permute.xlu1 %1788 }
 0x2ae   :  { %v2467_v14 = vpack.c.bf16 %v1466_v9, %v1465_v7  ;;  %v1467_v15 = vmax.f32 %v1386_v10, 0.0  ;;  %v1456_v16 = vpop.f32.mrb[16].mxu1  ;;  %1485 = vmatprep.subr.mxu0 %v1464_v0 }
 0x2af   :  { %v1468_v17 = vmax.f32 %v1388_v12, 0.0  ;;  %v1457_v18 = vadd.f32 %v1456_v16, %v1101_v50  ;;  %v1458_v19 = vpop.f32.mrb[17].mxu1  ;;  %2462 = vmatprep.subr.bf16.mxu1 %v2461_v13  ;;  %v1904_v16 = vld [vmem:[%s2950_s11 + $0x8] sm:$0xff] }
 0x2b0   :  { %2464 = vmatpush1.bf16.msra.mxu1 %v2463_v6  ;;  %v2465_v21 = vpack.c.bf16 %v1467_v15, %v1466_v9  ;;  %v1459_v24 = vadd.f32 %v1458_v19, %v1101_v50  ;;  %v1909_v19 = vld [vmem:[%s2950_s11 + $0x30] sm:$0xff] }
 0x2b1   :  { %v2471_v22 = vpack.c.bf16 %v1468_v17, %v1467_v15  ;;  %v1469_v23 = vmax.f32 %v1457_v18, 0.0  ;;  %1486 = vmatpush1.msra.mxu0 %v1463_v62  ;;  %1556 = vmatprep.subr.mxu1 %v1466_v9  ;;  %v1784_v62 = vpop.permute.xlu0 %1783  ;;  %v1799_v5 = vpop.permute.xlu1 %1798  ;;  %v1905_v18 = vld [vmem:[%s2950_s11 + $0x10] sm:$0xff] }
 0x2b2   :  { %2261 = vmatmul.mubr.msk.f32.vlgmr.msra.gmra.mrb[18].mxu0 %vm654_vm4, %v1471_v20  ;;  %2466 = vmatprep.subr.bf16.mxu0 %v2465_v21  ;;  %v1470_v26 = vmax.f32 %v1459_v24, 0.0  ;;  %v1910_v21 = vld [vmem:[%s2950_s11 + $0x38] sm:$0xff]  ;;  %v1913_v24 = vld [vmem:[%s2950_s11 + $0x50] sm:$0xff] }
 0x2b3   :  { %v2469_v25 = vpack.c.bf16 %v1469_v23, %v1468_v17  ;;  %2468 = vmatpush1.bf16.msra.mxu0 %v2467_v14  ;;  %1687 = vmatprep.mubr.f32.mxu0 %v2521_v2 }
 0x2b4   :  { %1557 = vmatpush1.msra.mxu1 %v1465_v7  ;;  %1627 = vmatprep.subr.mxu0 %v1468_v17  ;;  %v1908_v17 = vld [vmem:[%s2950_s11 + $0x28] sm:$0xff] }
 0x2b5   :  { %2262 = vmatmul.mubr.msk.f32.vlgmr.msra.gmra.mrb[18].mxu1 %vm654_vm4, %v1471_v20  ;;  %2470 = vmatprep.subr.bf16.mxu1 %v2469_v25  ;;  %v1794_v8 = vpop.permute.xlu0 %1793  ;;  %v1914_v25 = vld [vmem:[%s2950_s11 + $0x58] sm:$0xff] }
 0x2b6   :  { %2472 = vmatpush1.bf16.msra.mxu1 %v2471_v22  ;;  %1758 = vmatprep.mubr.f32.mxu1 %v2521_v2  ;;  %v1911_v22 = vld [vmem:[%s2950_s11 + $0x40] sm:$0xff] }
 0x2b7   :  { %1628 = vmatpush1.msra.mxu0 %v1467_v15  ;;  %1698 = vmatprep.subr.mxu1 %v1470_v26  ;;  %v1915_v26 = vld [vmem:[%s2950_s11 + $0x60] sm:$0xff] }
 0x2b8   :  { %2263 = vmatmul.mubr.msk.f32.vlgmr.msra.gmra.mrb[20].mxu0 %vm654_vm4, %v1471_v20 }
 0x2b9   :  { %2333 = vmatprep.mubr.msk.f32.mxu0 %vm1801_vm5, %v1773_v27  ;;  %v1916_v27 = vld [vmem:[%s2950_s11 + $0x68] sm:$0xff] }
 0x2ba   :  { %1699 = vmatpush1.msra.mxu1 %v1469_v23  ;;  %v1912_v23 = vld [vmem:[%s2950_s11 + $0x48] sm:$0xff] }
 0x2bb   :  { %2264 = vmatmul.mubr.msk.f32.vlgmr.msra.gmra.mrb[20].mxu1 %vm654_vm4, %v1471_v20  ;;  %v1906_v20 = vld [vmem:[%s2950_s11 + $0x18] sm:$0xff] }
 0x2bc   :  { %2353 = vmatprep.mubr.msk.f32.mxu1 %vm2015_vm6, %v1907_v60 }
 0x385   :  { %v1547_v29 = vpop.f32.mrb[18].mxu0 }
 0x386   :  { %v1548_v30 = vadd.f32 %v1547_v29, %v1476_v28  ;;  %v1549_v31 = vpop.f32.mrb[19].mxu0  ;;  %v1918_v29 = vld [vmem:[%s2950_s11 + $0x78] sm:$0xff] }
 0x387   :  { %v1550_v32 = vadd.f32 %v1549_v31, %v1476_v28  ;;  %v1938_v31 = vpop.permute.xlu0 %1937 }
 0x388   :  { %v1765_v2 = vmax.f32 %v1548_v30, 0.0  ;;  %v1618_v33 = vpop.f32.mrb[18].mxu1  ;;  %v1943_v30 = vpop.permute.xlu1 %1942 }
 0x389   :  { %v1766_v34 = vmax.f32 %v1550_v32, 0.0  ;;  %v1619_v35 = vadd.f32 %v1618_v33, %v1476_v28  ;;  %v1620_v36 = vpop.f32.mrb[19].mxu1 }
 0x38a   :  { %v1621_v37 = vadd.f32 %v1620_v36, %v1476_v28 }
 0x38b   :  { %v2473_v38 = vpack.c.bf16 %v1766_v34, %v1765_v2  ;;  %v1767_v39 = vmax.f32 %v1619_v35, 0.0  ;;  %v1689_v40 = vpop.f32.mrb[20].mxu0  ;;  %v1948_v2 = vpop.permute.xlu0 %1947 }
 0x38c   :  { %v1768_v41 = vmax.f32 %v1621_v37, 0.0  ;;  %v1690_v42 = vadd.f32 %v1689_v40, %v1476_v28  ;;  %v1691_v43 = vpop.f32.mrb[21].mxu0  ;;  %v1953_v32 = vpop.permute.xlu1 %1952 }
 0x38d   :  { %v1692_v44 = vadd.f32 %v1691_v43, %v1476_v28  ;;  %2474 = vmatprep.subr.bf16.mxu0 %v2473_v38 }
 0x38e   :  { %v2477_v45 = vpack.c.bf16 %v1768_v41, %v1767_v39  ;;  %v1769_v46 = vmax.f32 %v1690_v42, 0.0  ;;  %v1760_v47 = vpop.f32.mrb[20].mxu1  ;;  %2476 = vmatpush3.bf16.msra.mxu0 %v2473_v38 }
 0x38f   :  { %v1770_v48 = vmax.f32 %v1692_v44, 0.0  ;;  %v1761_v49 = vadd.f32 %v1760_v47, %v1476_v28  ;;  %v1762_v50 = vpop.f32.mrb[21].mxu1  ;;  %v1958_v34 = vpop.permute.xlu0 %1957 }
 0x390   :  { %v1763_v51 = vadd.f32 %v1762_v50, %v1476_v28  ;;  %2478 = vmatprep.subr.bf16.mxu0 %v2477_v45  ;;  %v1917_v28 = vld [vmem:[%s2950_s11 + $0x70] sm:$0xff]  ;;  %v1963_v33 = vpop.permute.xlu1 %1962 }
 0x391   :  { %v2481_v52 = vpack.c.bf16 %v1770_v48, %v1769_v46  ;;  %v1771_v53 = vmax.f32 %v1761_v49, 0.0 }
 0x392   :  { %v1772_v54 = vmax.f32 %v1763_v51, 0.0  ;;  %2480 = vmatpush3.bf16.msra.mxu0 %v2477_v45 }
 0x393   :  { %2482 = vmatprep.subr.bf16.mxu0 %v2481_v52  ;;  %v1968_v36 = vpop.permute.xlu0 %1967 }
 0x394   :  { %v2485_v55 = vpack.c.bf16 %v1772_v54, %v1771_v53  ;;  %v1973_v35 = vpop.permute.xlu1 %1972 }
 0x396   :  { %2484 = vmatpush3.bf16.msra.mxu0 %v2481_v52 }
 0x397   :  { %2486 = vmatprep.subr.bf16.mxu0 %v2485_v55  ;;  %v1978_v46 = vpop.permute.xlu0 %1977 }
 0x398   :  { %v1983_v43 = vpop.permute.xlu1 %1982 }
 0x39a   :  { %2488 = vmatpush3.bf16.msra.mxu0 %v2485_v55 }
 0x39c   :  { %v1993_v55 = vpop.permute.xlu1 %1992 }
 0x39d   :  { %2334 = vmatmul.mubr.msk.f32.vlgmr.msra.gmra.mrb[22].mxu0 %vm1801_vm5, %v1774_v56 }
 0x39e   :  { %2336 = vmatprep.mubr.msk.f32.mxu0 %vm1801_vm5, %v1775_v57  ;;  %v1988_v57 = vpop.permute.xlu0 %1987 }
 0x3a1   :  { %2337 = vmatmul.mubr.msk.f32.gmra.mrb[24].mxu0 %vm1801_vm5, %v1776_v58 }
 0x3a2   :  { %2347 = vmatprep.mubr.msk.f32.mxu0 %vm2015_vm6, %v1903_v59 }
 0x470   :  { %v2335_v63 = vpop.f32.mrb[22].mxu0 }
 0x471   :  { %v1886_v0 = vadd.f32 %v2335_v63, %v1789_v61  ;;  %v1880_v1 = vpop.f32.mrb[23].mxu0 }
 0x472   :  { %v1881_v3 = vadd.f32 %v1880_v1, %v1784_v62 }
 0x473   :  { %v1900_v4 = vmax.f32 %v1886_v0, 0.0  ;;  %v2003_v0 = vpop.permute.xlu1 %2002 }
 0x474   :  { %v1899_v6 = vmax.f32 %v1881_v3, 0.0  ;;  %v2338_v7 = vpop.f32.mrb[24].mxu0  ;;  %v1998_v3 = vpop.permute.xlu0 %1997 }
 0x475   :  { %v1896_v9 = vadd.f32 %v2338_v7, %v1799_v5  ;;  %v1890_v10 = vpop.f32.mrb[25].mxu0 }
 0x476   :  { %v2489_v11 = vpack.c.bf16 %v1900_v4, %v1899_v6  ;;  %v1891_v12 = vadd.f32 %v1890_v10, %v1794_v8 }
 0x477   :  { %v1902_v13 = vmax.f32 %v1896_v9, 0.0  ;;  %v2013_v8 = vpop.permute.xlu1 %2012 }
 0x478   :  { %v1901_v14 = vmax.f32 %v1891_v12, 0.0  ;;  %2490 = vmatprep.subr.bf16.mxu0 %v2489_v11  ;;  %2497 = vmatprep.subr.bf16.mxu1 %v2489_v11  ;;  %v2008_v10 = vpop.permute.xlu0 %2007 }
 0x479   :  { %2492 = vmatpush3.bf16.msra.mxu0 %v2489_v11  ;;  %2499 = vmatpush3.bf16.msra.mxu1 %v2489_v11 }
 0x47a   :  { %v2493_v15 = vpack.c.bf16 %v1902_v13, %v1901_v14 }
 0x47c   :  { %2494 = vmatprep.subr.bf16.mxu0 %v2493_v15  ;;  %2498 = vmatprep.subr.bf16.mxu1 %v2493_v15 }
 0x47d   :  { %2496 = vmatpush3.bf16.msra.mxu0 %v2493_v15  ;;  %2500 = vmatpush3.bf16.msra.mxu1 %v2493_v15 }
 0x480   :  { %2348 = vmatmul.mubr.msk.f32.vlgmr.msra.gmra.mrb[26].mxu0 %vm2015_vm6, %v1904_v16  ;;  %2354 = vmatmul.mubr.msk.f32.vlgmr.msra.gmra.mrb[22].mxu1 %vm2015_vm6, %v1908_v17 }
 0x481   :  { %2350 = vmatprep.mubr.msk.f32.mxu0 %vm2015_vm6, %v1905_v18  ;;  %2356 = vmatprep.mubr.msk.f32.mxu1 %vm2015_vm6, %v1909_v19 }
 0x484   :  { %2351 = vmatmul.mubr.msk.f32.gmra.mrb[28].mxu0 %vm2015_vm6, %v1906_v20  ;;  %2357 = vmatmul.mubr.msk.f32.gmra.mrb[24].mxu1 %vm2015_vm6, %v1910_v21 }
 0x485   :  { %2359 = vmatprep.mubr.msk.f32.mxu1 %vm2015_vm6, %v1911_v22 }
 0x488   :  { %2360 = vmatmul.mubr.msk.f32.gmra.mrb[26].mxu1 %vm2015_vm6, %v1912_v23 }
 0x489   :  { %2362 = vmatprep.mubr.msk.f32.mxu1 %vm2015_vm6, %v1913_v24 }
 0x48c   :  { %2363 = vmatmul.mubr.msk.f32.gmra.mrb[28].mxu1 %vm2015_vm6, %v1914_v25 }
 0x48d   :  { %2365 = vmatprep.mubr.msk.f32.mxu1 %vm2015_vm6, %v1915_v26 }
 0x490   :  { %2366 = vmatmul.mubr.msk.f32.gmra.mrb[30].mxu1 %vm2015_vm6, %v1916_v27 }
 0x491   :  { %2368 = vmatprep.mubr.msk.f32.mxu1 %vm2015_vm6, %v1917_v28 }
 0x494   :  { %2369 = vmatmul.mubr.msk.f32.gmra.mrb[32].mxu1 %vm2015_vm6, %v1918_v29 }
 0x553   :  { %v2349_v37 = vpop.f32.mrb[26].mxu0  ;;  %v2355_v38 = vpop.f32.mrb[22].mxu1 }
 0x554   :  { %v2136_v39 = vadd.f32 %v2349_v37, %v1943_v30  ;;  %v2156_v40 = vadd.f32 %v2355_v38, %v1963_v33  ;;  %v2130_v41 = vpop.f32.mrb[27].mxu0  ;;  %v2150_v42 = vpop.f32.mrb[23].mxu1 }
 0x555   :  { %v2131_v44 = vadd.f32 %v2130_v41, %v1938_v31  ;;  %v2151_v45 = vadd.f32 %v2150_v42, %v1958_v34 }
 0x556   :  { %2210 = vst [vmem:[%s2951_s13 + $0x8] sm:$0xff] %v2136_v39  ;;  %2214 = vst [vmem:[%s2951_s13 + $0x28] sm:$0xff] %v2156_v40 }
 0x557   :  { %2209 = vst [vmem:[%s2951_s13] sm:$0xff] %v2131_v44  ;;  %2213 = vst [vmem:[%s2951_s13 + $0x20] sm:$0xff] %v2151_v45  ;;  %v2352_v47 = vpop.f32.mrb[28].mxu0  ;;  %v2358_v48 = vpop.f32.mrb[24].mxu1 }
 0x558   :  { %v2146_v49 = vadd.f32 %v2352_v47, %v1953_v32  ;;  %v2166_v50 = vadd.f32 %v2358_v48, %v1973_v35  ;;  %v2140_v51 = vpop.f32.mrb[29].mxu0  ;;  %v2160_v52 = vpop.f32.mrb[25].mxu1 }
 0x559   :  { %v2141_v53 = vadd.f32 %v2140_v51, %v1948_v2  ;;  %v2161_v54 = vadd.f32 %v2160_v52, %v1968_v36 }
 0x55a   :  { %2212 = vst [vmem:[%s2951_s13 + $0x18] sm:$0xff] %v2146_v49  ;;  %2216 = vst [vmem:[%s2951_s13 + $0x38] sm:$0xff] %v2166_v50 }
 0x55b   :  { %2211 = vst [vmem:[%s2951_s13 + $0x10] sm:$0xff] %v2141_v53  ;;  %2215 = vst [vmem:[%s2951_s13 + $0x30] sm:$0xff] %v2161_v54  ;;  %v2361_v56 = vpop.f32.mrb[26].mxu1 }
 0x55c   :  { %v2176_v58 = vadd.f32 %v2361_v56, %v1983_v43  ;;  %v2170_v59 = vpop.f32.mrb[27].mxu1 }
 0x55d   :  { %v2171_v60 = vadd.f32 %v2170_v59, %v1978_v46 }
 0x55e   :  { %2218 = vst [vmem:[%s2951_s13 + $0x48] sm:$0xff] %v2176_v58 }
 0x55f   :  { %2217 = vst [vmem:[%s2951_s13 + $0x40] sm:$0xff] %v2171_v60  ;;  %v2364_v61 = vpop.f32.mrb[28].mxu1 }
 0x560   :  { %v2186_v62 = vadd.f32 %v2364_v61, %v1993_v55  ;;  %v2180_v63 = vpop.f32.mrb[29].mxu1 }
 0x561   :  { %v2181_v1 = vadd.f32 %v2180_v63, %v1988_v57 }
 0x562   :  { %2220 = vst [vmem:[%s2951_s13 + $0x58] sm:$0xff] %v2186_v62 }
 0x563   :  { %2219 = vst [vmem:[%s2951_s13 + $0x50] sm:$0xff] %v2181_v1  ;;  %v2367_v4 = vpop.f32.mrb[30].mxu1 }
 0x564   :  { %v2196_v5 = vadd.f32 %v2367_v4, %v2003_v0  ;;  %v2190_v6 = vpop.f32.mrb[31].mxu1 }
 0x565   :  { %v2191_v7 = vadd.f32 %v2190_v6, %v1998_v3 }
 0x566   :  { %2222 = vst [vmem:[%s2951_s13 + $0x68] sm:$0xff] %v2196_v5 }
 0x567   :  { %2221 = vst [vmem:[%s2951_s13 + $0x60] sm:$0xff] %v2191_v7  ;;  %v2370_v9 = vpop.f32.mrb[32].mxu1 }
 0x568   :  { %v2206_v11 = vadd.f32 %v2370_v9, %v2013_v8  ;;  %v2200_v12 = vpop.f32.mrb[33].mxu1 }
 0x569   :  { %v2201_v13 = vadd.f32 %v2200_v12, %v2008_v10 }
 0x56a   :  { %2224 = vst [vmem:[%s2951_s13 + $0x78] sm:$0xff] %v2206_v11 }
 0x56b   :  { %2223 = vst [vmem:[%s2951_s13 + $0x70] sm:$0xff] %v2201_v13 }

</bundles_post_ra>
